<compile_context>
chip_gen: v7x
topology: tpu7x:2x2x1
jax: 0.10.0
libtpu: 0.0.40
codegen_flags: <defaults>
</compile_context>

<pallas_src>
import functools

import jax
import jax.numpy as jnp
from jax.experimental import pallas as pl
from jax.experimental.pallas import tpu as pltpu


def _round_up(n, m):
    return ((n + m - 1) // m) * m


def _dyrelu_b_kernel(coef_ref, x_ref, o_ref):
    # coef_ref: (rb, 4) f32 -- per-row (= per (batch, channel)) a1, a2, b1, b2
    # x_ref / o_ref: (rb, lb) -- rows on sublanes, F*T on lanes (lane-dense I/O)
    x = x_ref[...]
    a1 = coef_ref[:, 0:1]          # (rb, 1) -> lane-broadcast against (rb, lb)
    a2 = coef_ref[:, 1:2]
    b1 = coef_ref[:, 2:3]
    b2 = coef_ref[:, 3:4]
    y = jnp.maximum(x * a1 + b1, x * a2 + b2)   # promotes to f32 if x is bf16
    o_ref[...] = y.astype(o_ref.dtype)


def dyrelu_b_pallas(x_nchw, g0, W, bvec, M=2,
                    row_block_max=256, target_block_bytes=2 * 1024 * 1024):
    """x_nchw: (B, C, F, T); g0: (B, D); W: (2*M*C, D); bvec: (2*M*C,)."""
    assert M == 2
    B, C, F, T = x_nchw.shape
    FT = F * T
    R = B * C
    itemsize = jnp.dtype(x_nchw.dtype).itemsize

    # ---- tiny coefficient network in plain JAX (hoisted out of the kernel) ---
    theta = g0.astype(jnp.float32) @ W.astype(jnp.float32).T \
        + bvec.astype(jnp.float32)                      # (B, 2*M*C)
    theta = jnp.tanh(0.5 * theta)                       # == 2*sigmoid(theta)-1
    theta = theta.reshape(B, C, 2 * M)
    lambdas = jnp.array([1.0] * M + [0.5] * M, jnp.float32)
    init_v = jnp.array([1.0] + [0.0] * (2 * M - 1), jnp.float32)
    coefs = (theta * lambdas + init_v).reshape(R, 2 * M)  # (R, 4): a1,a2,b1,b2

    # ---- transpose-free, lane-dense data layout: (B*C, F*T) view of NCHW ----
    x2 = x_nchw.reshape(R, FT)

    # ---- tiling: no HBM padding; size blocks to a ~2 MiB byte budget --------
    sub = 8 if itemsize >= 4 else (16 if itemsize == 2 else 32)   # sublane tile
    rb = min(row_block_max, _round_up(R, sub))
    if rb >= R:
        rb = R                               # full-dim row block (always legal)

    lb_budget = max(128, (target_block_bytes // max(rb * itemsize, 1)) // 128 * 128)
    if FT % 128 == 0:
        # largest 128-multiple divisor of FT within budget -> unmasked stores
        lb = 128
        m = 128
        cap = min(FT, lb_budget)
        while m <= cap:
            if FT % m == 0:
                lb = m
            m += 128
    else:
        lb = min(lb_budget, _round_up(FT, 128))
        if lb >= FT:
            lb = FT                          # full-dim lane block (always legal)

    # v7x: keep >= 2 blocks on a 'parallel' axis so both TensorCores stream.
    if pl.cdiv(R, rb) * pl.cdiv(FT, lb) < 2:
        if FT > 128:
            lb = max(128, _round_up(pl.cdiv(FT, 2), 128))
        elif R > sub:
            rb = max(sub, _round_up(pl.cdiv(R, 2), sub))

    grid = (pl.cdiv(R, rb), pl.cdiv(FT, lb))

    bytes_accessed = 2 * R * FT * itemsize + R * (2 * M) * 4
    out = pl.pallas_call(
        _dyrelu_b_kernel,
        out_shape=jax.ShapeDtypeStruct((R, FT), x_nchw.dtype),
        grid=grid,
        in_specs=[
            pl.BlockSpec((rb, 2 * M), lambda r, l: (r, 0)),   # coefficients
            pl.BlockSpec((rb, lb), lambda r, l: (r, l)),      # x
        ],
        out_specs=pl.BlockSpec((rb, lb), lambda r, l: (r, l)),
        input_output_aliases={1: 0},          # in-place when caller donates x
        compiler_params=pltpu.CompilerParams(
            dimension_semantics=("parallel", "parallel")),
        cost_estimate=pl.CostEstimate(
            flops=3 * R * FT, transcendentals=0, bytes_accessed=bytes_accessed),
    )(coefs, x2)

    return out.reshape(B, C, F, T)


def dyrelu_b_reference(x_nchw, g0, W, bvec, M=2):
    """Pure-JAX mirror of the PyTorch forward (for verification)."""
    B, C = x_nchw.shape[0], x_nchw.shape[1]
    hc = g0.reshape(B, -1)
    theta = hc @ W.T + bvec
    theta = 2.0 * jax.nn.sigmoid(theta) - 1.0
    lambdas = jnp.array([1.0] * M + [0.5] * M, dtype=jnp.float32)
    init_v = jnp.array([1.0] + [0.0] * (2 * M - 1), dtype=jnp.float32)
    relu_coefs = theta.reshape(B, C, 1, 1, 2 * M) * lambdas + init_v
    x_mapped = (x_nchw[..., None] * relu_coefs[:, :, :, :, :M]
                + relu_coefs[:, :, :, :, M:])
    return jnp.maximum(x_mapped[..., 0], x_mapped[..., 1])


if __name__ == "__main__":
    B, C, F, T = 2, 4, 16, 16     # x: NCHW
    D = 32                        # context_dim
    M = 2

    key = jax.random.PRNGKey(0)
    kx, kg, kw, kb = jax.random.split(key, 4)

    x = jax.random.normal(kx, (B, C, F, T), dtype=jnp.float32)
    g0 = jax.random.normal(kg, (B, D), dtype=jnp.float32)      # g[0].view(b, -1)

    # Deterministic nn.Linear(context_dim, 2*M*channels) params
    bound = 1.0 / (D ** 0.5)
    W = jax.random.uniform(kw, (2 * M * C, D), jnp.float32, -bound, bound)
    bvec = jax.random.uniform(kb, (2 * M * C,), jnp.float32, -bound, bound)

    fn = jax.jit(functools.partial(dyrelu_b_pallas, M=M))
    out = jax.block_until_ready(fn(x, g0, W, bvec))

    ref = dyrelu_b_reference(x, g0, W, bvec, M=M)
    assert out.shape == (B, C, F, T)
    assert jnp.allclose(out, ref, atol=1e-5, rtol=1e-5), "mismatch vs reference"

    # bf16 I/O path (halves HBM bytes; compute promoted to f32 in-kernel)
    out_bf16 = jax.block_until_ready(fn(x.astype(jnp.bfloat16), g0, W, bvec))
    assert out_bf16.dtype == jnp.bfloat16
    assert jnp.allclose(out_bf16.astype(jnp.float32), ref, atol=3e-2, rtol=3e-2), \
        "bf16 mismatch vs reference"

    print("KERNEL_OK")
</pallas_src>

<mosaic_0001>
module attributes {stable_mosaic.version = 11 : i64} {
  func.func @_dyrelu_b_kernel(%arg0: i32, %arg1: i32, %arg2: memref<8x4xf32, #tpu.memory_space<vmem>>, %arg3: memref<8x128xf32, #tpu.memory_space<vmem>>, %arg4: memref<8x128xf32, #tpu.memory_space<vmem>>) attributes {dimension_semantics = [#tpu.dimension_semantics<parallel>, #tpu.dimension_semantics<parallel>], iteration_bounds = array<i64: 1, 2>, scalar_prefetch = 0 : i64, scratch_operands = 0 : i64, tpu.core_type = #tpu.core_type<tc>, window_params = [{transform_indices = @transform_0, window_bounds = array<i64: 8, 4>}, {transform_indices = @transform_1, window_bounds = array<i64: 8, 128>}, {transform_indices = @transform_2, window_bounds = array<i64: 8, 128>}]} {
    %c0 = arith.constant 0 : index
    %c0_0 = arith.constant 0 : index
    %0 = vector.load %arg3[%c0, %c0_0] : memref<8x128xf32, #tpu.memory_space<vmem>>, vector<8x128xf32>
    %c0_1 = arith.constant 0 : index
    %c0_2 = arith.constant 0 : index
    %1 = vector.load %arg2[%c0_1, %c0_2] : memref<8x4xf32, #tpu.memory_space<vmem>>, vector<8x1xf32>
    %c0_3 = arith.constant 0 : index
    %c1 = arith.constant 1 : index
    %2 = vector.load %arg2[%c0_3, %c1] : memref<8x4xf32, #tpu.memory_space<vmem>>, vector<8x1xf32>
    %c0_4 = arith.constant 0 : index
    %c2 = arith.constant 2 : index
    %3 = vector.load %arg2[%c0_4, %c2] : memref<8x4xf32, #tpu.memory_space<vmem>>, vector<8x1xf32>
    %c0_5 = arith.constant 0 : index
    %c3 = arith.constant 3 : index
    %4 = vector.load %arg2[%c0_5, %c3] : memref<8x4xf32, #tpu.memory_space<vmem>>, vector<8x1xf32>
    %5 = vector.broadcast %1 : vector<8x1xf32> to vector<8x128xf32>
    %6 = arith.mulf %0, %5 : vector<8x128xf32>
    %7 = vector.broadcast %3 : vector<8x1xf32> to vector<8x128xf32>
    %8 = arith.addf %6, %7 : vector<8x128xf32>
    %9 = vector.broadcast %2 : vector<8x1xf32> to vector<8x128xf32>
    %10 = arith.mulf %0, %9 : vector<8x128xf32>
    %11 = vector.broadcast %4 : vector<8x1xf32> to vector<8x128xf32>
    %12 = arith.addf %10, %11 : vector<8x128xf32>
    %13 = arith.maximumf %8, %12 : vector<8x128xf32>
    %c0_6 = arith.constant 0 : index
    %c0_7 = arith.constant 0 : index
    %14 = vector.load %arg4[%c0_6, %c0_7] : memref<8x128xf32, #tpu.memory_space<vmem>>, vector<8x128xf32>
    tpu.vector_store %arg4[%c0_6, %c0_7], %13 {strides = array<i32>} : memref<8x128xf32, #tpu.memory_space<vmem>>, vector<8x128xf32>,
    return
  }
  func.func @transform_0(%arg0: i32, %arg1: i32) -> (i32, i32) {
    %c0_i32 = arith.constant 0 : i32
    %c0_i32_0 = arith.constant 0 : i32
    return %arg0, %c0_i32 : i32, i32
  }
  func.func @transform_1(%arg0: i32, %arg1: i32) -> (i32, i32) {
    %c0_i32 = arith.constant 0 : i32
    return %arg0, %arg1 : i32, i32
  }
  func.func @transform_2(%arg0: i32, %arg1: i32) -> (i32, i32) {
    %c0_i32 = arith.constant 0 : i32
    return %arg0, %arg1 : i32, i32
  }
}

</mosaic_0001>

<bundles_post_ra>
// kernel: dyrelu_b_pallas.1
= control target key start
LH: loop header
LB: loop body
LE: loop exit
PB: predicated region body
PF: predicated region fallthrough
CT: control target
= control target key end

     0   :  { %s402_s9 = smov 0   ;;  %s404_s10 = smov 0   ;;  %s438_s0 = inlined_call_operand.vmem [shape: f32[8,4], index: 0, kind: input, shape index: {}]   ;;  %s439_s1 = inlined_call_operand.vmem [shape: f32[8,256], index: 1, kind: input, shape index: {}, may-alias: {1,2}]   ;;  %s440_s2 = inlined_call_operand.vmem [shape: f32[8,256], index: 2, kind: output, shape index: {}, may-alias: {1,2}]  }
   0x1   :  { %s406_s11 = smov 0  }
   0x2 LB: > { %s21_s12 = sadd.s32 1, %s377_s10  ;;  %p321_p0 = scmp.ge.s32.totalorder %s381_s11, 1  ;;  %s381_s11 = sphi %s406_s11, %s12_s11   ;;  %s377_s10 = sphi %s404_s10, %s442_s10   ;;  %s373_s9 = sphi %s402_s9, %s441_s9  }
   0x3   : > { %p22_p1 = scmp.ge.s32.totalorder %s21_s12, 2  ;;  %p140_p2 = scmp.lt.s32.totalorder %s381_s11, 3 }
   0x5   : > { %s444_s12 = smov (%p22_p1, %s21_s12), 0  ;;  %p141_p3 = pnand %p321_p0, %p140_p2 }
   0x6   : > { %v193_v0 = vld [vmem:[%s438_s0] sm:$0xff] (!%p141_p3)  ;;  %v383_v1 = vmov (!%p141_p3), 0   ;;  %v384_v2 = vmov (!%p141_p3), 2   ;;  %v385_v3 = vmov (!%p141_p3), 1   ;;  %v386_v4 = vmov (!%p141_p3), 3   ;;  %p178_p4 = scmp.lt.s32.totalorder (!%p141_p3), %s373_s9, 1 }
   0x7   : > { %144 = sbr.rel (%p141_p3) target bundleno = 148 (0x94), region = 28  ;;  %354 = vset.pattern.permute.xlu0 (!%p141_p3), %v383_v1  ;;  %356 = vset.pattern.permute.xlu1 (!%p141_p3), %v384_v2 }
   0x8   : > { %196 = vperm.xlu0 (!%p141_p3), %354, %v193_v0   ;;  %201 = vperm.xlu1 (!%p141_p3), %356, %v193_v0  }
   0xc   : > { %355 = vset.pattern.permute.xlu0 (!%p141_p3), %v385_v3  ;;  %357 = vset.pattern.permute.xlu1 (!%p141_p3), %v386_v4 }
   0xd   : > { %206 = vperm.xlu0 (!%p141_p3), %355, %v193_v0   ;;  %211 = vperm.xlu1 (!%p141_p3), %357, %v193_v0  }
   0xe   : > { %s446_s9 = smov (!%p178_p4, %s373_s9), 1 }
   0xf   : > { %s322_s15 = sshll.u32 %s446_s9, 3 }
  0x10   : > { %s183_s18 = scalar_lea.vmem %s439_s1, %s322_s15  ;;  %s191_s21 = scalar_lea.vmem %s440_s2, %s322_s15 }
  0x11   : > { %358 = vset.pattern.permute.xlu0 %v386_v4  ;;  %v192_v7 = vld [vmem:[%s183_s18] sm:$0xff] }
  0x87   : > { %v197_v5 = vpop.permute.xlu0 %196  ;;  %v202_v6 = vpop.permute.xlu1 %201 }
  0x88   : > { %v199_v8 = vmul.f32 %v197_v5, %v192_v7 }
  0x8a   : > { %v204_v12 = vadd.f32 %v202_v6, %v199_v8 }
  0x8c   : > { %v207_v9 = vpop.permute.xlu0 %206  ;;  %v212_v10 = vpop.permute.xlu1 %211 }
  0x8d   : > { %v209_v11 = vmul.f32 %v207_v9, %v192_v7 }
  0x8f   : > { %v214_v13 = vadd.f32 %v212_v10, %v209_v11 }
  0x91   : > { %v215_v14 = vmax.f32 %v204_v12, %v214_v13 }
  0x93   : > { %216 = vst [vmem:[%s191_s21] sm:$0xff] %v215_v14 }
  0x94 PF: > { %s12_s11 = sadd.s32 1, %s381_s11   ;;  %s441_s9 = smov %s377_s10 }
  0x95   : > { %p9_p5 = scmp.ge.s32.totalorder %s12_s11, 4   ;;  %s442_s10 = smov %s444_s12 }
  0x97   :  { %11 = sbr.rel (!%p9_p5) target bundleno = 2 (0x2), region = 61 }

</bundles_post_ra>
